<compile_context>
chip_gen: v7x
topology: tpu7x:2x2x1
jax: 0.10.0
libtpu: 0.0.40
codegen_flags: <defaults>
</compile_context>

<pallas_src>
import jax
import jax.numpy as jnp
from jax.experimental import pallas as pl
from jax.experimental.pallas import tpu as pltpu

# ---- "hyperparams" of the synthetic native tcnn module -----------------
N_INPUT_DIMS = 32        # network input width
N_OUTPUT_DIMS = 4        # user-visible output width
OUT_PADDED = 16          # tcnn pads output width to a multiple of 16
HIDDEN_WIDTH = 64        # n_neurons
BATCH_GRANULARITY = 128  # _C.batch_size_granularity()
PARAM_DTYPE = jnp.bfloat16   # fp16 param precision -> bf16 on TPU
LOSS_SCALE = 128.0       # _C.default_loss_scale(Fp16); only used in backward

# Batch-tile candidates (descending).  Bigger tiles amortize grid overhead;
# per-tile VMEM is tiny (a few MiB even at 4096 rows), safely under the
# 16/32 MiB scoped-VMEM defaults on v5e/v6e/v7x.
_TILE_CANDIDATES = (4096, 2048, 1024, 512, 256, 128)


def _choose_tile_b(padded_batch):
    """Largest tile that divides the padded batch and leaves >=2 grid steps
    (so both v7x TensorCores get work); single tile if the batch is only one
    granularity block."""
    for cand in _TILE_CANDIDATES:
        if padded_batch % cand == 0 and padded_batch // cand >= 2:
            return cand
    return padded_batch  # exactly one 128-row granularity block


# ---------------------------- kernels ------------------------------------

def _mlp_compute(x_ref, w0_ref, w1_ref, w2_ref):
    """relu(relu(x@W0)@W1)@W2 with bf16 MXU operands and f32 accumulation."""
    x = x_ref[...].astype(PARAM_DTYPE)                      # f32 -> bf16 operand
    h = jnp.dot(x, w0_ref[...], preferred_element_type=jnp.float32)
    h = jnp.maximum(h, 0.0).astype(PARAM_DTYPE)             # ReLU on f32 acc
    h = jnp.dot(h, w1_ref[...], preferred_element_type=jnp.float32)
    h = jnp.maximum(h, 0.0).astype(PARAM_DTYPE)
    return jnp.dot(h, w2_ref[...], preferred_element_type=jnp.float32)


def _mlp_kernel_lane_dense(x_ref, w0_ref, w1_ref, w2_ref, o_ref):
    out = _mlp_compute(x_ref, w0_ref, w1_ref, w2_ref).astype(o_ref.dtype)
    tile_b = out.shape[0]
    # [TILE_B, 16] -> [TILE_B//8, 128]: row-major-equivalent bytes, but stores
    # become full 128-lane vst instead of masked 16-lane partial stores.
    o_ref[...] = out.reshape(tile_b // 8, 8 * OUT_PADDED)


def _mlp_kernel_plain(x_ref, w0_ref, w1_ref, w2_ref, o_ref):
    o_ref[...] = _mlp_compute(x_ref, w0_ref, w1_ref, w2_ref).astype(o_ref.dtype)


# ------------------------- pallas_call wrappers ---------------------------

def _weight_specs():
    return [
        pl.BlockSpec((N_INPUT_DIMS, HIDDEN_WIDTH), lambda i: (0, 0)),
        pl.BlockSpec((HIDDEN_WIDTH, HIDDEN_WIDTH), lambda i: (0, 0)),
        pl.BlockSpec((HIDDEN_WIDTH, OUT_PADDED), lambda i: (0, 0)),
    ]


def _call_lane_dense(x_padded, w0, w1, w2, tile_b):
    b_pad = x_padded.shape[0]
    grid = (b_pad // tile_b,)
    out = pl.pallas_call(
        _mlp_kernel_lane_dense,
        out_shape=jax.ShapeDtypeStruct((b_pad // 8, 8 * OUT_PADDED), PARAM_DTYPE),
        grid_spec=pltpu.PrefetchScalarGridSpec(
            num_scalar_prefetch=0,
            grid=grid,
            in_specs=[pl.BlockSpec((tile_b, N_INPUT_DIMS), lambda i: (i, 0))]
            + _weight_specs(),
            out_specs=pl.BlockSpec((tile_b // 8, 8 * OUT_PADDED),
                                   lambda i: (i, 0)),
        ),
        compiler_params=pltpu.CompilerParams(
            dimension_semantics=("parallel",)),
    )(x_padded, w0, w1, w2)
    # Undo the lane-dense packing: same row-major bytes, free reshape.
    return out.reshape(b_pad, OUT_PADDED)


def _call_plain(x_padded, w0, w1, w2, tile_b):
    b_pad = x_padded.shape[0]
    grid = (b_pad // tile_b,)
    return pl.pallas_call(
        _mlp_kernel_plain,
        out_shape=jax.ShapeDtypeStruct((b_pad, OUT_PADDED), PARAM_DTYPE),
        grid_spec=pltpu.PrefetchScalarGridSpec(
            num_scalar_prefetch=0,
            grid=grid,
            in_specs=[pl.BlockSpec((tile_b, N_INPUT_DIMS), lambda i: (i, 0))]
            + _weight_specs(),
            out_specs=pl.BlockSpec((tile_b, OUT_PADDED), lambda i: (i, 0)),
        ),
        compiler_params=pltpu.CompilerParams(
            dimension_semantics=("parallel",)),
    )(x_padded, w0, w1, w2)


_LANE_DENSE_OK = None   # None = untested; True/False cached after first call


def _fused_mlp(x_padded, w0, w1, w2):
    """x_padded: [B_pad, N_INPUT_DIMS] float32, B_pad % 128 == 0."""
    global _LANE_DENSE_OK
    b_pad = x_padded.shape[0]
    assert b_pad % BATCH_GRANULARITY == 0
    tile_b = _choose_tile_b(b_pad)
    if _LANE_DENSE_OK is None:
        try:
            out = jax.block_until_ready(
                _call_lane_dense(x_padded, w0, w1, w2, tile_b))
            _LANE_DENSE_OK = True
            return out
        except Exception:
            _LANE_DENSE_OK = False
    if _LANE_DENSE_OK:
        return _call_lane_dense(x_padded, w0, w1, w2, tile_b)
    return _call_plain(x_padded, w0, w1, w2, tile_b)


# ------------------------------ Module ------------------------------------

class PallasTcnnModule:
    """JAX/Pallas equivalent of tinycudann Module (fused-MLP network)."""

    def __init__(self, seed=1337):
        self.seed = seed
        self.n_input_dims = N_INPUT_DIMS
        self.n_output_dims = N_OUTPUT_DIMS
        self.loss_scale = LOSS_SCALE
        # Deterministic param init (mimics native_tcnn_module.initial_params):
        # uniform(-1/sqrt(fan_in), 1/sqrt(fan_in)) per layer, one flat vector.
        key = jax.random.PRNGKey(seed)
        k0, k1, k2 = jax.random.split(key, 3)
        s0 = 1.0 / jnp.sqrt(N_INPUT_DIMS)
        s1 = 1.0 / jnp.sqrt(HIDDEN_WIDTH)
        w0 = jax.random.uniform(k0, (N_INPUT_DIMS, HIDDEN_WIDTH),
                                jnp.float32, -s0, s0)
        w1 = jax.random.uniform(k1, (HIDDEN_WIDTH, HIDDEN_WIDTH),
                                jnp.float32, -s1, s1)
        w2 = jax.random.uniform(k2, (HIDDEN_WIDTH, OUT_PADDED),
                                jnp.float32, -s1, s1)
        self.params = jnp.concatenate(
            [w0.reshape(-1), w1.reshape(-1), w2.reshape(-1)]).astype(jnp.float32)
        self._shapes = [(N_INPUT_DIMS, HIDDEN_WIDTH),
                        (HIDDEN_WIDTH, HIDDEN_WIDTH),
                        (HIDDEN_WIDTH, OUT_PADDED)]

    def _unpack_params(self, params):
        # The `.to(param_precision)` cast from forward(): flat -> per-layer bf16.
        ws, off = [], 0
        for (i, o) in self._shapes:
            n = i * o
            ws.append(params[off:off + n].reshape(i, o).astype(PARAM_DTYPE))
            off += n
        return ws

    def __call__(self, x):
        batch_size = x.shape[0]
        padded = ((batch_size + BATCH_GRANULARITY - 1)
                  // BATCH_GRANULARITY) * BATCH_GRANULARITY
        x = x.astype(jnp.float32)          # `.to(torch.float)` in the spec
        if padded != batch_size:
            x = jnp.pad(x, ((0, padded - batch_size), (0, 0)))
        w0, w1, w2 = self._unpack_params(self.params)
        out = _fused_mlp(x, w0, w1, w2)
        # output[:batch_size, :n_output_dims]; stays bf16 ("half"), as tcnn does.
        return out[:batch_size, :self.n_output_dims]

    # TODO(synk): autograd machinery (_module_function backward, loss_scale
    # rescaling, bwd_bwd_input) is training-only and not part of the forward kernel.


# ------------------------------- test --------------------------------------

def _reference_forward(x, w0, w1, w2, batch_size):
    """Plain-JAX reference with the same bf16-operand / f32-accumulate math."""
    h = jnp.dot(x[:batch_size].astype(PARAM_DTYPE), w0,
                preferred_element_type=jnp.float32)
    h = jnp.maximum(h, 0.0).astype(PARAM_DTYPE)
    h = jnp.dot(h, w1, preferred_element_type=jnp.float32)
    h = jnp.maximum(h, 0.0).astype(PARAM_DTYPE)
    out = jnp.dot(h, w2, preferred_element_type=jnp.float32)
    return out[:, :N_OUTPUT_DIMS]


if __name__ == "__main__":
    module = PallasTcnnModule(seed=1337)
    w0, w1, w2 = module._unpack_params(module.params)
    key = jax.random.PRNGKey(0)

    # Case 1: tiny batch (pads to one 128-row granularity block).
    batch = 8
    x = jax.random.uniform(key, (batch, N_INPUT_DIMS), jnp.float32)
    out = jax.block_until_ready(module(x))
    assert out.shape == (batch, N_OUTPUT_DIMS), out.shape
    ref = _reference_forward(x, w0, w1, w2, batch)
    assert jnp.allclose(out.astype(jnp.float32), ref, atol=5e-2, rtol=5e-2)

    # Case 2: ragged batch spanning several grid steps (pads 300 -> 384).
    batch2 = 300
    x2 = jax.random.uniform(jax.random.PRNGKey(1), (batch2, N_INPUT_DIMS),
                            jnp.float32)
    out2 = jax.block_until_ready(module(x2))
    assert out2.shape == (batch2, N_OUTPUT_DIMS), out2.shape
    ref2 = _reference_forward(x2, w0, w1, w2, batch2)
    assert jnp.allclose(out2.astype(jnp.float32), ref2, atol=5e-2, rtol=5e-2)

    print("KERNEL_OK")
</pallas_src>

<mosaic_0001>
module attributes {stable_mosaic.version = 11 : i64} {
  func.func @_mlp_kernel_lane_dense(%arg0: i32, %arg1: memref<128x32xf32, #tpu.memory_space<vmem>>, %arg2: memref<32x64xbf16, #tpu.memory_space<vmem>>, %arg3: memref<64x64xbf16, #tpu.memory_space<vmem>>, %arg4: memref<64x16xbf16, #tpu.memory_space<vmem>>, %arg5: memref<16x128xbf16, #tpu.memory_space<vmem>>) attributes {dimension_semantics = [#tpu.dimension_semantics<parallel>], iteration_bounds = array<i64: 1>, scalar_prefetch = 0 : i64, scratch_operands = 0 : i64, tpu.core_type = #tpu.core_type<tc>, window_params = [{transform_indices = @transform_0, window_bounds = array<i64: 128, 32>}, {pipeline_mode = #tpu.pipeline_mode<synchronous>, transform_indices = @transform_1, window_bounds = array<i64: 32, 64>}, {pipeline_mode = #tpu.pipeline_mode<synchronous>, transform_indices = @transform_2, window_bounds = array<i64: 64, 64>}, {pipeline_mode = #tpu.pipeline_mode<synchronous>, transform_indices = @transform_3, window_bounds = array<i64: 64, 16>}, {transform_indices = @transform_4, window_bounds = array<i64: 16, 128>}]} {
    %c0 = arith.constant 0 : index
    %c0_0 = arith.constant 0 : index
    %0 = vector.load %arg1[%c0, %c0_0] : memref<128x32xf32, #tpu.memory_space<vmem>>, vector<128x32xf32>
    %1 = arith.truncf %0 : vector<128x32xf32> to vector<128x32xbf16>
    %c0_1 = arith.constant 0 : index
    %c0_2 = arith.constant 0 : index
    %2 = vector.load %arg2[%c0_1, %c0_2] : memref<32x64xbf16, #tpu.memory_space<vmem>>, vector<32x64xbf16>
    %cst = arith.constant dense<0.000000e+00> : vector<128x64xf32>
    %3 = tpu.matmul %1, %2, %cst {dimension_numbers = #tpu.dot_dimension_numbers<[1], [0], [0], [1], [0, 0, 1, 1], [], []>} : vector<128x32xbf16>, vector<32x64xbf16>, vector<128x64xf32> -> vector<128x64xf32>
    %cst_3 = arith.constant 0.000000e+00 : f32
    %4 = vector.broadcast %cst_3 : f32 to vector<128x64xf32>
    %5 = arith.maximumf %3, %4 : vector<128x64xf32>
    %6 = arith.truncf %5 : vector<128x64xf32> to vector<128x64xbf16>
    %c0_4 = arith.constant 0 : index
    %c0_5 = arith.constant 0 : index
    %7 = vector.load %arg3[%c0_4, %c0_5] : memref<64x64xbf16, #tpu.memory_space<vmem>>, vector<64x64xbf16>
    %cst_6 = arith.constant dense<0.000000e+00> : vector<128x64xf32>
    %8 = tpu.matmul %6, %7, %cst_6 {dimension_numbers = #tpu.dot_dimension_numbers<[1], [0], [0], [1], [0, 0, 1, 1], [], []>} : vector<128x64xbf16>, vector<64x64xbf16>, vector<128x64xf32> -> vector<128x64xf32>
    %cst_7 = arith.constant 0.000000e+00 : f32
    %9 = vector.broadcast %cst_7 : f32 to vector<128x64xf32>
    %10 = arith.maximumf %8, %9 : vector<128x64xf32>
    %11 = arith.truncf %10 : vector<128x64xf32> to vector<128x64xbf16>
    %c0_8 = arith.constant 0 : index
    %c0_9 = arith.constant 0 : index
    %12 = vector.load %arg4[%c0_8, %c0_9] : memref<64x16xbf16, #tpu.memory_space<vmem>>, vector<64x16xbf16>
    %cst_10 = arith.constant dense<0.000000e+00> : vector<128x16xf32>
    %13 = tpu.matmul %11, %12, %cst_10 {dimension_numbers = #tpu.dot_dimension_numbers<[1], [0], [0], [1], [0, 0, 1, 1], [], []>} : vector<128x64xbf16>, vector<64x16xbf16>, vector<128x16xf32> -> vector<128x16xf32>
    %14 = arith.truncf %13 : vector<128x16xf32> to vector<128x16xbf16>
    %15 = vector.shape_cast %14 : vector<128x16xbf16> to vector<16x128xbf16>
    %c0_11 = arith.constant 0 : index
    %c0_12 = arith.constant 0 : index
    %16 = vector.load %arg5[%c0_11, %c0_12] : memref<16x128xbf16, #tpu.memory_space<vmem>>, vector<16x128xbf16>
    tpu.vector_store %arg5[%c0_11, %c0_12], %15 {strides = array<i32>} : memref<16x128xbf16, #tpu.memory_space<vmem>>, vector<16x128xbf16>,
    return
  }
  func.func @transform_0(%arg0: i32) -> (i32, i32) {
    %c0_i32 = arith.constant 0 : i32
    %c0_i32_0 = arith.constant 0 : i32
    return %arg0, %c0_i32 : i32, i32
  }
  func.func @transform_1(%arg0: i32) -> (i32, i32) {
    %c0_i32 = arith.constant 0 : i32
    %c0_i32_0 = arith.constant 0 : i32
    %c0_i32_1 = arith.constant 0 : i32
    return %c0_i32, %c0_i32_0 : i32, i32
  }
  func.func @transform_2(%arg0: i32) -> (i32, i32) {
    %c0_i32 = arith.constant 0 : i32
    %c0_i32_0 = arith.constant 0 : i32
    %c0_i32_1 = arith.constant 0 : i32
    return %c0_i32, %c0_i32_0 : i32, i32
  }
  func.func @transform_3(%arg0: i32) -> (i32, i32) {
    %c0_i32 = arith.constant 0 : i32
    %c0_i32_0 = arith.constant 0 : i32
    %c0_i32_1 = arith.constant 0 : i32
    return %c0_i32, %c0_i32_0 : i32, i32
  }
  func.func @transform_4(%arg0: i32) -> (i32, i32) {
    %c0_i32 = arith.constant 0 : i32
    %c0_i32_0 = arith.constant 0 : i32
    return %arg0, %c0_i32 : i32, i32
  }
}

module attributes {stable_mosaic.version = 11 : i64} {
  func.func @_mlp_kernel_plain(%arg0: i32, %arg1: memref<128x32xf32, #tpu.memory_space<vmem>>, %arg2: memref<32x64xbf16, #tpu.memory_space<vmem>>, %arg3: memref<64x64xbf16, #tpu.memory_space<vmem>>, %arg4: memref<64x16xbf16, #tpu.memory_space<vmem>>, %arg5: memref<128x16xbf16, #tpu.memory_space<vmem>>) attributes {dimension_semantics = [#tpu.dimension_semantics<parallel>], iteration_bounds = array<i64: 1>, scalar_prefetch = 0 : i64, scratch_operands = 0 : i64, tpu.core_type = #tpu.core_type<tc>, window_params = [{transform_indices = @transform_0, window_bounds = array<i64: 128, 32>}, {pipeline_mode = #tpu.pipeline_mode<synchronous>, transform_indices = @transform_1, window_bounds = array<i64: 32, 64>}, {pipeline_mode = #tpu.pipeline_mode<synchronous>, transform_indices = @transform_2, window_bounds = array<i64: 64, 64>}, {pipeline_mode = #tpu.pipeline_mode<synchronous>, transform_indices = @transform_3, window_bounds = array<i64: 64, 16>}, {transform_indices = @transform_4, window_bounds = array<i64: 128, 16>}]} {
    %c0 = arith.constant 0 : index
    %c0_0 = arith.constant 0 : index
    %0 = vector.load %arg1[%c0, %c0_0] : memref<128x32xf32, #tpu.memory_space<vmem>>, vector<128x32xf32>
    %1 = arith.truncf %0 : vector<128x32xf32> to vector<128x32xbf16>
    %c0_1 = arith.constant 0 : index
    %c0_2 = arith.constant 0 : index
    %2 = vector.load %arg2[%c0_1, %c0_2] : memref<32x64xbf16, #tpu.memory_space<vmem>>, vector<32x64xbf16>
    %cst = arith.constant dense<0.000000e+00> : vector<128x64xf32>
    %3 = tpu.matmul %1, %2, %cst {dimension_numbers = #tpu.dot_dimension_numbers<[1], [0], [0], [1], [0, 0, 1, 1], [], []>} : vector<128x32xbf16>, vector<32x64xbf16>, vector<128x64xf32> -> vector<128x64xf32>
    %cst_3 = arith.constant 0.000000e+00 : f32
    %4 = vector.broadcast %cst_3 : f32 to vector<128x64xf32>
    %5 = arith.maximumf %3, %4 : vector<128x64xf32>
    %6 = arith.truncf %5 : vector<128x64xf32> to vector<128x64xbf16>
    %c0_4 = arith.constant 0 : index
    %c0_5 = arith.constant 0 : index
    %7 = vector.load %arg3[%c0_4, %c0_5] : memref<64x64xbf16, #tpu.memory_space<vmem>>, vector<64x64xbf16>
    %cst_6 = arith.constant dense<0.000000e+00> : vector<128x64xf32>
    %8 = tpu.matmul %6, %7, %cst_6 {dimension_numbers = #tpu.dot_dimension_numbers<[1], [0], [0], [1], [0, 0, 1, 1], [], []>} : vector<128x64xbf16>, vector<64x64xbf16>, vector<128x64xf32> -> vector<128x64xf32>
    %cst_7 = arith.constant 0.000000e+00 : f32
    %9 = vector.broadcast %cst_7 : f32 to vector<128x64xf32>
    %10 = arith.maximumf %8, %9 : vector<128x64xf32>
    %11 = arith.truncf %10 : vector<128x64xf32> to vector<128x64xbf16>
    %c0_8 = arith.constant 0 : index
    %c0_9 = arith.constant 0 : index
    %12 = vector.load %arg4[%c0_8, %c0_9] : memref<64x16xbf16, #tpu.memory_space<vmem>>, vector<64x16xbf16>
    %cst_10 = arith.constant dense<0.000000e+00> : vector<128x16xf32>
    %13 = tpu.matmul %11, %12, %cst_10 {dimension_numbers = #tpu.dot_dimension_numbers<[1], [0], [0], [1], [0, 0, 1, 1], [], []>} : vector<128x64xbf16>, vector<64x16xbf16>, vector<128x16xf32> -> vector<128x16xf32>
    %14 = arith.truncf %13 : vector<128x16xf32> to vector<128x16xbf16>
    %c0_11 = arith.constant 0 : index
    %c0_12 = arith.constant 0 : index
    %15 = vector.load %arg5[%c0_11, %c0_12] : memref<128x16xbf16, #tpu.memory_space<vmem>>, vector<128x16xbf16>
    tpu.vector_store %arg5[%c0_11, %c0_12], %14 {strides = array<i32>} : memref<128x16xbf16, #tpu.memory_space<vmem>>, vector<128x16xbf16>,
    return
  }
  func.func @transform_0(%arg0: i32) -> (i32, i32) {
    %c0_i32 = arith.constant 0 : i32
    %c0_i32_0 = arith.constant 0 : i32
    return %arg0, %c0_i32 : i32, i32
  }
  func.func @transform_1(%arg0: i32) -> (i32, i32) {
    %c0_i32 = arith.constant 0 : i32
    %c0_i32_0 = arith.constant 0 : i32
    %c0_i32_1 = arith.constant 0 : i32
    return %c0_i32, %c0_i32_0 : i32, i32
  }
  func.func @transform_2(%arg0: i32) -> (i32, i32) {
    %c0_i32 = arith.constant 0 : i32
    %c0_i32_0 = arith.constant 0 : i32
    %c0_i32_1 = arith.constant 0 : i32
    return %c0_i32, %c0_i32_0 : i32, i32
  }
  func.func @transform_3(%arg0: i32) -> (i32, i32) {
    %c0_i32 = arith.constant 0 : i32
    %c0_i32_0 = arith.constant 0 : i32
    %c0_i32_1 = arith.constant 0 : i32
    return %c0_i32, %c0_i32_0 : i32, i32
  }
  func.func @transform_4(%arg0: i32) -> (i32, i32) {
    %c0_i32 = arith.constant 0 : i32
    %c0_i32_0 = arith.constant 0 : i32
    return %arg0, %c0_i32 : i32, i32
  }
}

</mosaic_0001>

<bundles_post_ra>
// kernel: tpu_custom_call.1
= control target key start
LH: loop header
LB: loop body
LE: loop exit
PB: predicated region body
PF: predicated region fallthrough
CT: control target
= control target key end

     0   :  { %vm58_vm0 = vcmask 261120   ;;  %vm236_vm1 = vcmask 523264   ;;  %vm599_vm2 = vcmask 125952   ;;  %s993_s1 = inlined_call_operand.vmem [shape: bf16[32,64], index: 1, kind: input, shape index: {}]   ;;  %s994_s0 = inlined_call_operand.vmem [shape: f32[128,32], index: 0, kind: input, shape index: {}]   ;;  %s995_s2 = inlined_call_operand.vmem [shape: bf16[64,64], index: 2, kind: input, shape index: {}]   ;;  %s996_s3 = inlined_call_operand.vmem [shape: bf16[64,16], index: 3, kind: input, shape index: {}]   ;;  %s997_s4 = inlined_call_operand.vmem [shape: bf16[128,16], index: 4, kind: output, shape index: {}]  }
   0x1   :  { %v792_v0 = vld [vmem:[%s993_s1] sm:$0xff]   ;;  %v793_v1 = vld [vmem:[%s993_s1 + $0x8] sm:$0xff]   ;;  %v20_v5 = vld [vmem:[%s994_s0 + $0x10] sm:$0xff] }
   0x2   :  { %720 = vmatprep.subr.bf16.mxu0 %v792_v0  ;;  %v18_v2 = vld [vmem:[%s994_s0] sm:$0xff]  ;;  %v19_v3 = vld [vmem:[%s994_s0 + $0x8] sm:$0xff]  ;;  %788 = vmatprep.subr.bf16.mxu1 %v792_v0  ;;  %v21_v6 = vld [vmem:[%s994_s0 + $0x18] sm:$0xff] }
   0x3   :  { %721 = vmatpush3.bf16.msra.mxu0 %v792_v0  ;;  %v34_v4 = vpack.c.bf16 %v19_v3, %v18_v2  ;;  %790 = vmatpush3.bf16.msra.mxu1 %v792_v0  ;;  %v22_v7 = vld [vmem:[%s994_s0 + $0x20] sm:$0xff]  ;;  %v23_v8 = vld [vmem:[%s994_s0 + $0x28] sm:$0xff]  ;;  %v28_v11 = vld [vmem:[%s994_s0 + $0x50] sm:$0xff]  ;;  %v35_v13 = vpack.c.bf16 %v21_v6, %v20_v5 }
   0x4   :  { %722 = vmatprep.subr.bf16.mxu0 %v793_v1  ;;  %789 = vmatprep.subr.bf16.mxu1 %v793_v1  ;;  %v26_v9 = vld [vmem:[%s994_s0 + $0x40] sm:$0xff]  ;;  %v27_v10 = vld [vmem:[%s994_s0 + $0x48] sm:$0xff]  ;;  %v29_v12 = vld [vmem:[%s994_s0 + $0x58] sm:$0xff]  ;;  %v36_v18 = vpack.c.bf16 %v23_v8, %v22_v7 }
   0x5   :  { %724 = vmatprep.mubr.msk.bf16.mxu0 %vm58_vm0, %v34_v4  ;;  %v38_v14 = vpack.c.bf16 %v27_v10, %v26_v9  ;;  %v39_v15 = vpack.c.bf16 %v29_v12, %v28_v11  ;;  %v30_v16 = vld [vmem:[%s994_s0 + $0x60] sm:$0xff]  ;;  %v31_v17 = vld [vmem:[%s994_s0 + $0x68] sm:$0xff]  ;;  %v24_v21 = vld [vmem:[%s994_s0 + $0x30] sm:$0xff] }
   0x6   :  { %v40_v19 = vpack.c.bf16 %v31_v17, %v30_v16  ;;  %v794_v20 = vld [vmem:[%s995_s2] sm:$0xff]   ;;  %v795_v22 = vld [vmem:[%s995_s2 + $0x8] sm:$0xff]   ;;  %v25_v23 = vld [vmem:[%s994_s0 + $0x38] sm:$0xff] }
   0x7   :  { %723 = vmatpush3.bf16.msra.mxu0 %v793_v1  ;;  %791 = vmatpush3.bf16.msra.mxu1 %v793_v1  ;;  %v32_v24 = vld [vmem:[%s994_s0 + $0x70] sm:$0xff]  ;;  %v33_v25 = vld [vmem:[%s994_s0 + $0x78] sm:$0xff]  ;;  %v37_v26 = vpack.c.bf16 %v25_v23, %v24_v21  ;;  %v798_v30 = vld [vmem:[%s996_s3] sm:$0xff]  }
   0x8   :  { %732 = vmatprep.mubr.msk.bf16.mxu1 %vm58_vm0, %v38_v14  ;;  %740 = vmatprep.subr.bf16.mxu1 %v794_v20  ;;  %v41_v27 = vpack.c.bf16 %v33_v25, %v32_v24  ;;  %v796_v28 = vld [vmem:[%s995_s2 + $0x10] sm:$0xff]   ;;  %v797_v29 = vld [vmem:[%s995_s2 + $0x18] sm:$0xff]   ;;  %v799_v31 = vld [vmem:[%s996_s3 + $0x8] sm:$0xff]  }
   0x9   :  { %764 = vmatprep.subr.bf16.mxu0 %v798_v30  ;;  %v800_v8 = vld [vmem:[%s996_s3 + $0x10] sm:$0xff]   ;;  %v801_v9 = vld [vmem:[%s996_s3 + $0x18] sm:$0xff]  }
   0xa   :  { %725 = vmatmul.mubr.msk.bf16.vlgmr.msra.gmra.mrb[0].mxu0 %vm58_vm0, %v35_v13  ;;  %733 = vmatmul.mubr.msk.bf16.vlgmr.msra.gmra.mrb[0].mxu1 %vm58_vm0, %v39_v15 }
   0xb   :  { %728 = vmatprep.mubr.msk.bf16.mxu0 %vm58_vm0, %v36_v18  ;;  %736 = vmatprep.mubr.msk.bf16.mxu1 %vm58_vm0, %v40_v19 }
   0xc   :  { %741 = vmatpush3.bf16.msra.mxu1 %v794_v20  ;;  %765 = vmatpush3.bf16.msra.mxu0 %v798_v30 }
   0xd   :  { %742 = vmatprep.subr.bf16.mxu1 %v795_v22  ;;  %766 = vmatprep.subr.bf16.mxu0 %v799_v31 }
  0x10   :  { %743 = vmatpush3.bf16.msra.mxu1 %v795_v22  ;;  %767 = vmatpush3.bf16.msra.mxu0 %v799_v31 }
  0x11   :  { %744 = vmatprep.subr.bf16.mxu1 %v796_v28  ;;  %768 = vmatprep.subr.bf16.mxu0 %v800_v8 }
  0x12   :  { %729 = vmatmul.mubr.msk.bf16.gmra.mrb[4].mxu0 %vm58_vm0, %v37_v26  ;;  %737 = vmatmul.mubr.msk.bf16.gmra.mrb[4].mxu1 %vm58_vm0, %v41_v27 }
  0x14   :  { %745 = vmatpush3.bf16.msra.mxu1 %v796_v28  ;;  %769 = vmatpush3.bf16.msra.mxu0 %v800_v8 }
  0x15   :  { %746 = vmatprep.subr.bf16.mxu1 %v797_v29  ;;  %770 = vmatprep.subr.bf16.mxu0 %v801_v9 }
  0x18   :  { %747 = vmatpush3.bf16.msra.mxu1 %v797_v29  ;;  %771 = vmatpush3.bf16.msra.mxu0 %v801_v9 }
  0xdd   :  { %v726_v32 = vpop.f32.mrb[0].mxu0  ;;  %v734_v33 = vpop.f32.mrb[0].mxu1 }
  0xde   :  { %v117_v34 = vpop.f32.mrb[1].mxu0  ;;  %v190_v35 = vmax.f32 %v734_v33, 0.0  ;;  %v149_v36 = vpop.f32.mrb[1].mxu1  ;;  %v182_v40 = vmax.f32 %v726_v32, 0.0 }
  0xdf   :  { %v727_v37 = vpop.f32.mrb[2].mxu0  ;;  %v188_v38 = vmax.f32 %v149_v36, 0.0  ;;  %v735_v39 = vpop.f32.mrb[2].mxu1  ;;  %v180_v45 = vmax.f32 %v117_v34, 0.0 }
  0xe0   :  { %v183_v41 = vmax.f32 %v727_v37, 0.0  ;;  %v120_v42 = vpop.f32.mrb[3].mxu0  ;;  %v191_v43 = vmax.f32 %v735_v39, 0.0  ;;  %v152_v44 = vpop.f32.mrb[3].mxu1 }
  0xe1   :  { %v181_v46 = vmax.f32 %v120_v42, 0.0  ;;  %v189_v47 = vmax.f32 %v152_v44, 0.0 }
  0xe2   :  { %v197_v48 = vpack.c.bf16 %v183_v41, %v182_v40  ;;  %v201_v49 = vpack.c.bf16 %v191_v43, %v190_v35 }
  0xe3   :  { %v196_v50 = vpack.c.bf16 %v181_v46, %v180_v45  ;;  %v200_v51 = vpack.c.bf16 %v189_v47, %v188_v38 }
  0xe5   :  { %v730_v52 = vpop.f32.mrb[4].mxu0  ;;  %748 = vmatprep.mubr.msk.bf16.mxu1 %vm236_vm1, %v196_v50  ;;  %v738_v53 = vpop.f32.mrb[4].mxu1 }
  0xe6   :  { %v133_v54 = vpop.f32.mrb[5].mxu0  ;;  %749 = vmatmul.mubr.msk.bf16.vlgmr.msra.gmra.mrb[8].mxu1 %vm236_vm1, %v197_v48  ;;  %v194_v55 = vmax.f32 %v738_v53, 0.0  ;;  %v165_v56 = vpop.f32.mrb[5].mxu1  ;;  %v186_v60 = vmax.f32 %v730_v52, 0.0 }
  0xe7   :  { %v731_v57 = vpop.f32.mrb[6].mxu0  ;;  %v192_v58 = vmax.f32 %v165_v56, 0.0  ;;  %v739_v59 = vpop.f32.mrb[6].mxu1  ;;  %v184_v1 = vmax.f32 %v133_v54, 0.0 }
  0xe8   :  { %v187_v61 = vmax.f32 %v731_v57, 0.0  ;;  %v136_v62 = vpop.f32.mrb[7].mxu0  ;;  %v195_v63 = vmax.f32 %v739_v59, 0.0  ;;  %v168_v0 = vpop.f32.mrb[7].mxu1 }
  0xe9   :  { %v185_v2 = vmax.f32 %v136_v62, 0.0  ;;  %v193_v3 = vmax.f32 %v168_v0, 0.0 }
  0xea   :  { %v199_v4 = vpack.c.bf16 %v187_v61, %v186_v60  ;;  %v203_v5 = vpack.c.bf16 %v195_v63, %v194_v55 }
  0xeb   :  { %v198_v6 = vpack.c.bf16 %v185_v2, %v184_v1  ;;  %v202_v7 = vpack.c.bf16 %v193_v3, %v192_v58 }
  0xed   :  { %752 = vmatprep.mubr.msk.bf16.mxu1 %vm236_vm1, %v198_v6 }
  0xee   :  { %753 = vmatmul.mubr.msk.bf16.gmra.mrb[12].mxu1 %vm236_vm1, %v199_v4 }
  0xef   :  { %756 = vmatprep.mubr.msk.bf16.mxu1 %vm236_vm1, %v200_v51 }
  0xf6   :  { %757 = vmatmul.mubr.msk.bf16.gmra.mrb[16].mxu1 %vm236_vm1, %v201_v49 }
  0xf7   :  { %760 = vmatprep.mubr.msk.bf16.mxu1 %vm236_vm1, %v202_v7 }
  0xfe   :  { %761 = vmatmul.mubr.msk.bf16.gmra.mrb[20].mxu1 %vm236_vm1, %v203_v5 }
 0x1b9   :  { %v750_v10 = vpop.f32.mrb[8].mxu1 }
 0x1ba   :  { %v295_v11 = vpop.f32.mrb[9].mxu1  ;;  %v360_v13 = vmax.f32 %v750_v10, 0.0 }
 0x1bb   :  { %v751_v12 = vpop.f32.mrb[10].mxu1  ;;  %v358_v16 = vmax.f32 %v295_v11, 0.0 }
 0x1bc   :  { %v361_v14 = vmax.f32 %v751_v12, 0.0  ;;  %v298_v15 = vpop.f32.mrb[11].mxu1 }
 0x1bd   :  { %v359_v17 = vmax.f32 %v298_v15, 0.0 }
 0x1be   :  { %v375_v18 = vpack.c.bf16 %v361_v14, %v360_v13 }
 0x1bf   :  { %v374_v19 = vpack.c.bf16 %v359_v17, %v358_v16 }
 0x1c1   :  { %v754_v20 = vpop.f32.mrb[12].mxu1  ;;  %772 = vmatprep.mubr.msk.bf16.mxu0 %vm236_vm1, %v374_v19 }
 0x1c2   :  { %v311_v21 = vpop.f32.mrb[13].mxu1  ;;  %773 = vmatmul.mubr.msk.bf16.vlgmr.msra.gmra.mrb[8].mxu0 %vm236_vm1, %v375_v18  ;;  %v364_v23 = vmax.f32 %v754_v20, 0.0 }
 0x1c3   :  { %v755_v22 = vpop.f32.mrb[14].mxu1  ;;  %v362_v26 = vmax.f32 %v311_v21, 0.0 }
 0x1c4   :  { %v365_v24 = vmax.f32 %v755_v22, 0.0  ;;  %v314_v25 = vpop.f32.mrb[15].mxu1 }
 0x1c5   :  { %v363_v27 = vmax.f32 %v314_v25, 0.0 }
 0x1c6   :  { %v377_v28 = vpack.c.bf16 %v365_v24, %v364_v23 }
 0x1c7   :  { %v376_v29 = vpack.c.bf16 %v363_v27, %v362_v26 }
 0x1c9   :  { %v758_v30 = vpop.f32.mrb[16].mxu1  ;;  %776 = vmatprep.mubr.msk.bf16.mxu0 %vm236_vm1, %v376_v29 }
 0x1ca   :  { %v327_v31 = vpop.f32.mrb[17].mxu1  ;;  %777 = vmatmul.mubr.msk.bf16.gmra.mrb[12].mxu0 %vm236_vm1, %v377_v28  ;;  %v368_v33 = vmax.f32 %v758_v30, 0.0 }
 0x1cb   :  { %v759_v32 = vpop.f32.mrb[18].mxu1  ;;  %v366_v36 = vmax.f32 %v327_v31, 0.0 }
 0x1cc   :  { %v369_v34 = vmax.f32 %v759_v32, 0.0  ;;  %v330_v35 = vpop.f32.mrb[19].mxu1 }
 0x1cd   :  { %v367_v37 = vmax.f32 %v330_v35, 0.0 }
 0x1ce   :  { %v379_v38 = vpack.c.bf16 %v369_v34, %v368_v33 }
 0x1cf   :  { %v378_v39 = vpack.c.bf16 %v367_v37, %v366_v36 }
 0x1d1   :  { %v762_v40 = vpop.f32.mrb[20].mxu1  ;;  %780 = vmatprep.mubr.msk.bf16.mxu0 %vm236_vm1, %v378_v39 }
 0x1d2   :  { %v343_v41 = vpop.f32.mrb[21].mxu1  ;;  %781 = vmatmul.mubr.msk.bf16.gmra.mrb[16].mxu0 %vm236_vm1, %v379_v38  ;;  %v372_v43 = vmax.f32 %v762_v40, 0.0 }
 0x1d3   :  { %v763_v42 = vpop.f32.mrb[22].mxu1  ;;  %v370_v46 = vmax.f32 %v343_v41, 0.0 }
 0x1d4   :  { %v373_v44 = vmax.f32 %v763_v42, 0.0  ;;  %v346_v45 = vpop.f32.mrb[23].mxu1 }
 0x1d5   :  { %v371_v47 = vmax.f32 %v346_v45, 0.0 }
 0x1d6   :  { %v381_v48 = vpack.c.bf16 %v373_v44, %v372_v43 }
 0x1d7   :  { %v380_v49 = vpack.c.bf16 %v371_v47, %v370_v46 }
 0x1d9   :  { %784 = vmatprep.mubr.msk.bf16.mxu0 %vm236_vm1, %v380_v49 }
 0x1da   :  { %785 = vmatmul.mubr.msk.bf16.gmra.mrb[20].mxu0 %vm236_vm1, %v381_v48 }
 0x295   :  { %v774_v50 = vpop.f32.mrb[8].mxu0 }
 0x296   :  { %v672_v51 = vpack.c.bf16 %v774_v50, %v774_v50  ;;  %v472_v52 = vpop.f32.mrb[9].mxu0 }
 0x297   :  { %v670_v53 = vpack.c.bf16 %v472_v52, %v472_v52  ;;  %v775_v54 = vpop.f32.mrb[10].mxu0 }
 0x298   :  { %602 = vst.msk [vmem:[%s997_s4 + $0x8] sm:$0xf] %vm599_vm2, %v672_v51  ;;  %v673_v55 = vpack.c.bf16 %v775_v54, %v775_v54  ;;  %v475_v56 = vpop.f32.mrb[11].mxu0 }
 0x299   :  { %600 = vst.msk [vmem:[%s997_s4] sm:$0xf] %vm599_vm2, %v670_v53  ;;  %v671_v57 = vpack.c.bf16 %v475_v56, %v475_v56 }
 0x29a   :  { %603 = vst.msk [vmem:[%s997_s4 + $0xc] sm:$0xf] %vm599_vm2, %v673_v55 }
 0x29b   :  { %601 = vst.msk [vmem:[%s997_s4 + $0x4] sm:$0xf] %vm599_vm2, %v671_v57 }
 0x29d   :  { %v778_v58 = vpop.f32.mrb[12].mxu0 }
 0x29e   :  { %v676_v59 = vpack.c.bf16 %v778_v58, %v778_v58  ;;  %v488_v60 = vpop.f32.mrb[13].mxu0 }
 0x29f   :  { %v674_v61 = vpack.c.bf16 %v488_v60, %v488_v60  ;;  %v779_v62 = vpop.f32.mrb[14].mxu0 }
 0x2a0   :  { %606 = vst.msk [vmem:[%s997_s4 + $0x18] sm:$0xf] %vm599_vm2, %v676_v59  ;;  %v677_v63 = vpack.c.bf16 %v779_v62, %v779_v62  ;;  %v491_v0 = vpop.f32.mrb[15].mxu0 }
 0x2a1   :  { %604 = vst.msk [vmem:[%s997_s4 + $0x10] sm:$0xf] %vm599_vm2, %v674_v61  ;;  %v675_v1 = vpack.c.bf16 %v491_v0, %v491_v0 }
 0x2a2   :  { %607 = vst.msk [vmem:[%s997_s4 + $0x1c] sm:$0xf] %vm599_vm2, %v677_v63 }
 0x2a3   :  { %605 = vst.msk [vmem:[%s997_s4 + $0x14] sm:$0xf] %vm599_vm2, %v675_v1 }
 0x2a5   :  { %v782_v2 = vpop.f32.mrb[16].mxu0 }
 0x2a6   :  { %v680_v3 = vpack.c.bf16 %v782_v2, %v782_v2  ;;  %v504_v4 = vpop.f32.mrb[17].mxu0 }
 0x2a7   :  { %v678_v5 = vpack.c.bf16 %v504_v4, %v504_v4  ;;  %v783_v6 = vpop.f32.mrb[18].mxu0 }
 0x2a8   :  { %610 = vst.msk [vmem:[%s997_s4 + $0x28] sm:$0xf] %vm599_vm2, %v680_v3  ;;  %v681_v7 = vpack.c.bf16 %v783_v6, %v783_v6  ;;  %v507_v8 = vpop.f32.mrb[19].mxu0 }
 0x2a9   :  { %608 = vst.msk [vmem:[%s997_s4 + $0x20] sm:$0xf] %vm599_vm2, %v678_v5  ;;  %v679_v9 = vpack.c.bf16 %v507_v8, %v507_v8 }
 0x2aa   :  { %611 = vst.msk [vmem:[%s997_s4 + $0x2c] sm:$0xf] %vm599_vm2, %v681_v7 }
 0x2ab   :  { %609 = vst.msk [vmem:[%s997_s4 + $0x24] sm:$0xf] %vm599_vm2, %v679_v9 }
 0x2ad   :  { %v786_v10 = vpop.f32.mrb[20].mxu0 }
 0x2ae   :  { %v684_v11 = vpack.c.bf16 %v786_v10, %v786_v10  ;;  %v520_v12 = vpop.f32.mrb[21].mxu0 }
 0x2af   :  { %v682_v13 = vpack.c.bf16 %v520_v12, %v520_v12  ;;  %v787_v14 = vpop.f32.mrb[22].mxu0 }
 0x2b0   :  { %614 = vst.msk [vmem:[%s997_s4 + $0x38] sm:$0xf] %vm599_vm2, %v684_v11  ;;  %v685_v15 = vpack.c.bf16 %v787_v14, %v787_v14  ;;  %v523_v16 = vpop.f32.mrb[23].mxu0 }
 0x2b1   :  { %612 = vst.msk [vmem:[%s997_s4 + $0x30] sm:$0xf] %vm599_vm2, %v682_v13  ;;  %v683_v17 = vpack.c.bf16 %v523_v16, %v523_v16 }
 0x2b2   :  { %615 = vst.msk [vmem:[%s997_s4 + $0x3c] sm:$0xf] %vm599_vm2, %v685_v15 }
 0x2b3   :  { %613 = vst.msk [vmem:[%s997_s4 + $0x34] sm:$0xf] %vm599_vm2, %v683_v17 }

</bundles_post_ra>
